<compile_context>
chip_gen: v5e
topology: v5e:2x2
jax: 0.10.0
libtpu: 0.0.40
codegen_flags: <defaults>
</compile_context>

<pallas_src>
import jax
import jax.numpy as jnp
from jax.experimental import pallas as pl
from jax.experimental.pallas import tpu as pltpu


def _round_up(a, b):
    return ((a + b - 1) // b) * b


def _threshold_map_kernel(pt_ref, w1_ref, a1_ref, c1_ref, w4_ref, b4_ref, o_ref):
    pt = pt_ref[...]                                                    # (K1, TM) f32
    # conv1 (3x3, pad=1) as a GEMM over im2col patches (MXU).
    y1 = jnp.dot(w1_ref[...], pt, preferred_element_type=jnp.float32)   # (Cout, TM)
    # BatchNorm (inference affine; conv1 bias folded in) + ReLU (VPU).
    y1 = jnp.maximum(a1_ref[...] * y1 + c1_ref[...], 0.0)
    # conv4 (1x1 -> 1 channel) as a per-channel weighted sublane reduction (XLU).
    y2 = jnp.sum(w4_ref[...] * y1, axis=0, keepdims=True) + b4_ref[...]  # (1, TM)
    # sigmoid (EUP exp + divide).
    o_ref[...] = (1.0 / (1.0 + jnp.exp(-y2))).astype(o_ref.dtype)


def threshold_map_forward(x, w1, b1, gamma, beta, running_mean, running_var,
                          w4, b4, *, eps=1e-5, target_block_bytes=4 << 20):
    """Fused Pallas TPU forward of ThresholdMap.  x: (N, Cin, H, W) NCHW."""
    N, Cin, H, W = x.shape
    Cout = w1.shape[0]
    K1 = Cin * 9
    M = N * H * W
    orig_dtype = x.dtype
    f32 = jnp.float32

    # ---- im2col (layout-only, done once in XLA) -------------------------------
    xp = jnp.pad(x.astype(f32), ((0, 0), (0, 0), (1, 1), (1, 1)))
    taps = [xp[:, :, kh:kh + H, kw:kw + W] for kh in range(3) for kw in range(3)]
    stk = jnp.stack(taps, axis=2)                        # (N, Cin, 9, H, W)
    pt = stk.transpose(1, 2, 0, 3, 4).reshape(K1, M)     # k = ci*9 + kh*3 + kw, m = (n,h,w)

    # ---- fold conv1 bias + BN running stats into a per-channel affine ---------
    scale = (gamma.astype(f32) / jnp.sqrt(running_var.astype(f32) + eps))          # (Cout,)
    a1 = scale.reshape(Cout, 1)
    c1 = (beta.astype(f32) + scale * (b1.astype(f32) - running_mean.astype(f32))).reshape(Cout, 1)
    w1r = w1.astype(f32).reshape(Cout, K1)
    w4v = w4.astype(f32).reshape(Cout, 1)                # conv4 weight is (1, Cout, 1, 1)
    b4v = b4.astype(f32).reshape(1, 1)

    # ---- large lane-dense tile; pad M up to the tile (never shrink the tile) --
    lane = 128
    tm = max(lane, (target_block_bytes // (K1 * 4)) // lane * lane)
    tm = min(tm, 8192, _round_up(M, lane))
    m_pad = _round_up(M, tm)
    if m_pad != M:
        pt = jnp.pad(pt, ((0, 0), (0, m_pad - M)))
    grid_m = m_pad // tm

    out2d = pl.pallas_call(
        _threshold_map_kernel,
        out_shape=jax.ShapeDtypeStruct((1, m_pad), f32),
        grid_spec=pltpu.PrefetchScalarGridSpec(
            num_scalar_prefetch=0,
            grid=(grid_m,),
            in_specs=[
                pl.BlockSpec((K1, tm), lambda i: (0, i)),     # patches^T (lane-dense)
                pl.BlockSpec((Cout, K1), lambda i: (0, 0)),   # conv1 weight (GEMM form)
                pl.BlockSpec((Cout, 1), lambda i: (0, 0)),    # BN scale
                pl.BlockSpec((Cout, 1), lambda i: (0, 0)),    # BN bias (conv bias folded)
                pl.BlockSpec((Cout, 1), lambda i: (0, 0)),    # conv4 weight
                pl.BlockSpec((1, 1), lambda i: (0, 0)),       # conv4 bias
            ],
            out_specs=pl.BlockSpec((1, tm), lambda i: (0, i)),
        ),
        compiler_params=pltpu.CompilerParams(
            dimension_semantics=("parallel",),
        ),
        cost_estimate=pl.CostEstimate(
            flops=2 * m_pad * K1 * Cout + 4 * m_pad * Cout + 2 * m_pad,
            transcendentals=m_pad,
            bytes_accessed=4 * (m_pad * K1 + m_pad + Cout * K1 + 3 * Cout + 1),
        ),
    )(pt, w1r, a1, c1, w4v, b4v)

    out = out2d[0, :M].reshape(N, H, W)[:, None, :, :]   # (N, 1, H, W)
    return out.astype(orig_dtype)


def _reference_forward(x, w1, b1, gamma, beta, running_mean, running_var, w4, b4,
                       *, eps=1e-5):
    dn = ("NCHW", "OIHW", "NCHW")
    y = jax.lax.conv_general_dilated(x, w1, window_strides=(1, 1),
                                     padding=((1, 1), (1, 1)), dimension_numbers=dn,
                                     precision=jax.lax.Precision.HIGHEST)
    y = y + b1[None, :, None, None]
    y = (y - running_mean[None, :, None, None]) * (
        gamma[None, :, None, None] / jnp.sqrt(running_var[None, :, None, None] + eps)
    ) + beta[None, :, None, None]
    y = jnp.maximum(y, 0.0)
    y = jax.lax.conv_general_dilated(y, w4, window_strides=(1, 1),
                                     padding=((0, 0), (0, 0)), dimension_numbers=dn,
                                     precision=jax.lax.Precision.HIGHEST)
    y = y + b4[None, :, None, None]
    return jax.nn.sigmoid(y)


if __name__ == "__main__":
    key = jax.random.PRNGKey(0)
    keys = jax.random.split(key, 9)
    N, Cin, Cout, H, W = 2, 4, 8, 16, 16

    x = jax.random.normal(keys[0], (N, Cin, H, W), dtype=jnp.float32)
    w1 = 0.2 * jax.random.normal(keys[1], (Cout, Cin, 3, 3), dtype=jnp.float32)
    b1 = 0.1 * jax.random.normal(keys[2], (Cout,), dtype=jnp.float32)
    gamma = 1.0 + 0.1 * jax.random.normal(keys[3], (Cout,), dtype=jnp.float32)
    beta = 0.1 * jax.random.normal(keys[4], (Cout,), dtype=jnp.float32)
    running_mean = 0.1 * jax.random.normal(keys[5], (Cout,), dtype=jnp.float32)
    running_var = jax.random.uniform(keys[6], (Cout,), minval=0.5, maxval=1.5,
                                     dtype=jnp.float32)
    w4 = 0.2 * jax.random.normal(keys[7], (1, Cout, 1, 1), dtype=jnp.float32)
    b4 = 0.1 * jax.random.normal(keys[8], (1,), dtype=jnp.float32)

    out = threshold_map_forward(x, w1, b1, gamma, beta, running_mean, running_var,
                                w4, b4)
    out = jax.block_until_ready(out)

    ref = _reference_forward(x, w1, b1, gamma, beta, running_mean, running_var,
                             w4, b4)
    assert out.shape == (N, 1, H, W) and out.dtype == x.dtype
    assert jnp.allclose(out, ref, atol=5e-3, rtol=5e-3), float(jnp.max(jnp.abs(out - ref)))
    print("KERNEL_OK")
</pallas_src>

<mosaic_0001>
module attributes {stable_mosaic.version = 11 : i64} {
  func.func @_threshold_map_kernel(%arg0: i32, %arg1: memref<36x512xf32, #tpu.memory_space<vmem>>, %arg2: memref<8x36xf32, #tpu.memory_space<vmem>>, %arg3: memref<8x1xf32, #tpu.memory_space<vmem>>, %arg4: memref<8x1xf32, #tpu.memory_space<vmem>>, %arg5: memref<8x1xf32, #tpu.memory_space<vmem>>, %arg6: memref<1x1xf32, #tpu.memory_space<vmem>>, %arg7: memref<1x512xf32, #tpu.memory_space<vmem>>) attributes {dimension_semantics = [#tpu.dimension_semantics<parallel>], iteration_bounds = array<i64: 1>, scalar_prefetch = 0 : i64, scratch_operands = 0 : i64, tpu.core_type = #tpu.core_type<tc>, window_params = [{transform_indices = @transform_0, window_bounds = array<i64: 36, 512>}, {pipeline_mode = #tpu.pipeline_mode<synchronous>, transform_indices = @transform_1, window_bounds = array<i64: 8, 36>}, {pipeline_mode = #tpu.pipeline_mode<synchronous>, transform_indices = @transform_2, window_bounds = array<i64: 8, 1>}, {pipeline_mode = #tpu.pipeline_mode<synchronous>, transform_indices = @transform_3, window_bounds = array<i64: 8, 1>}, {pipeline_mode = #tpu.pipeline_mode<synchronous>, transform_indices = @transform_4, window_bounds = array<i64: 8, 1>}, {pipeline_mode = #tpu.pipeline_mode<synchronous>, transform_indices = @transform_5, window_bounds = array<i64: 1, 1>}, {transform_indices = @transform_6, window_bounds = array<i64: 1, 512>}]} {
    %c0 = arith.constant 0 : index
    %c0_0 = arith.constant 0 : index
    %0 = vector.load %arg1[%c0, %c0_0] : memref<36x512xf32, #tpu.memory_space<vmem>>, vector<36x512xf32>
    %c0_1 = arith.constant 0 : index
    %c0_2 = arith.constant 0 : index
    %1 = vector.load %arg2[%c0_1, %c0_2] : memref<8x36xf32, #tpu.memory_space<vmem>>, vector<8x36xf32>
    %cst = arith.constant dense<0.000000e+00> : vector<8x512xf32>
    %2 = tpu.matmul %1, %0, %cst {dimension_numbers = #tpu.dot_dimension_numbers<[1], [0], [0], [1], [0, 0, 1, 1], [], []>} : vector<8x36xf32>, vector<36x512xf32>, vector<8x512xf32> -> vector<8x512xf32>
    %c0_3 = arith.constant 0 : index
    %c0_4 = arith.constant 0 : index
    %3 = vector.load %arg3[%c0_3, %c0_4] : memref<8x1xf32, #tpu.memory_space<vmem>>, vector<8x1xf32>
    %4 = vector.broadcast %3 : vector<8x1xf32> to vector<8x512xf32>
    %5 = arith.mulf %4, %2 : vector<8x512xf32>
    %c0_5 = arith.constant 0 : index
    %c0_6 = arith.constant 0 : index
    %6 = vector.load %arg4[%c0_5, %c0_6] : memref<8x1xf32, #tpu.memory_space<vmem>>, vector<8x1xf32>
    %7 = vector.broadcast %6 : vector<8x1xf32> to vector<8x512xf32>
    %8 = arith.addf %5, %7 : vector<8x512xf32>
    %cst_7 = arith.constant 0.000000e+00 : f32
    %9 = vector.broadcast %cst_7 : f32 to vector<8x512xf32>
    %10 = arith.maximumf %8, %9 : vector<8x512xf32>
    %c0_8 = arith.constant 0 : index
    %c0_9 = arith.constant 0 : index
    %11 = vector.load %arg5[%c0_8, %c0_9] : memref<8x1xf32, #tpu.memory_space<vmem>>, vector<8x1xf32>
    %12 = vector.broadcast %11 : vector<8x1xf32> to vector<8x512xf32>
    %13 = arith.mulf %12, %10 : vector<8x512xf32>
    %cst_10 = arith.constant dense<0.000000e+00> : vector<512xf32>
    %14 = vector.multi_reduction <add>, %13, %cst_10 [0] : vector<8x512xf32> to vector<512xf32>
    %15 = vector.shape_cast %14 : vector<512xf32> to vector<1x512xf32>
    %c0_11 = arith.constant 0 : index
    %c0_12 = arith.constant 0 : index
    %16 = vector.load %arg6[%c0_11, %c0_12] : memref<1x1xf32, #tpu.memory_space<vmem>>, vector<1x1xf32>
    %17 = vector.broadcast %16 : vector<1x1xf32> to vector<1x512xf32>
    %18 = arith.addf %15, %17 : vector<1x512xf32>
    %cst_13 = arith.constant 0.000000e+00 : f32
    %19 = vector.broadcast %cst_13 : f32 to vector<1x512xf32>
    %20 = arith.subf %19, %18 : vector<1x512xf32>
    %21 = math.exp %20 : vector<1x512xf32>
    %cst_14 = arith.constant 1.000000e+00 : f32
    %22 = vector.broadcast %cst_14 : f32 to vector<1x512xf32>
    %23 = arith.addf %22, %21 : vector<1x512xf32>
    %cst_15 = arith.constant 1.000000e+00 : f32
    %24 = vector.broadcast %cst_15 : f32 to vector<1x512xf32>
    %25 = arith.divf %24, %23 : vector<1x512xf32>
    %c0_16 = arith.constant 0 : index
    %c0_17 = arith.constant 0 : index
    %26 = vector.load %arg7[%c0_16, %c0_17] : memref<1x512xf32, #tpu.memory_space<vmem>>, vector<1x512xf32>
    tpu.vector_store %arg7[%c0_16, %c0_17], %25 {strides = array<i32>} : memref<1x512xf32, #tpu.memory_space<vmem>>, vector<1x512xf32>,
    return
  }
  func.func @transform_0(%arg0: i32) -> (i32, i32) {
    %c0_i32 = arith.constant 0 : i32
    %c0_i32_0 = arith.constant 0 : i32
    return %c0_i32, %arg0 : i32, i32
  }
  func.func @transform_1(%arg0: i32) -> (i32, i32) {
    %c0_i32 = arith.constant 0 : i32
    %c0_i32_0 = arith.constant 0 : i32
    %c0_i32_1 = arith.constant 0 : i32
    return %c0_i32, %c0_i32_0 : i32, i32
  }
  func.func @transform_2(%arg0: i32) -> (i32, i32) {
    %c0_i32 = arith.constant 0 : i32
    %c0_i32_0 = arith.constant 0 : i32
    %c0_i32_1 = arith.constant 0 : i32
    return %c0_i32, %c0_i32_0 : i32, i32
  }
  func.func @transform_3(%arg0: i32) -> (i32, i32) {
    %c0_i32 = arith.constant 0 : i32
    %c0_i32_0 = arith.constant 0 : i32
    %c0_i32_1 = arith.constant 0 : i32
    return %c0_i32, %c0_i32_0 : i32, i32
  }
  func.func @transform_4(%arg0: i32) -> (i32, i32) {
    %c0_i32 = arith.constant 0 : i32
    %c0_i32_0 = arith.constant 0 : i32
    %c0_i32_1 = arith.constant 0 : i32
    return %c0_i32, %c0_i32_0 : i32, i32
  }
  func.func @transform_5(%arg0: i32) -> (i32, i32) {
    %c0_i32 = arith.constant 0 : i32
    %c0_i32_0 = arith.constant 0 : i32
    %c0_i32_1 = arith.constant 0 : i32
    return %c0_i32, %c0_i32_0 : i32, i32
  }
  func.func @transform_6(%arg0: i32) -> (i32, i32) {
    %c0_i32 = arith.constant 0 : i32
    %c0_i32_0 = arith.constant 0 : i32
    return %c0_i32, %arg0 : i32, i32
  }
}

</mosaic_0001>

<bundles_post_ra>
// kernel: tpu_custom_call.1
= control target key start
LH: loop header
LB: loop body
LE: loop exit
PB: predicated region body
PF: predicated region fallthrough
CT: control target
= control target key end

     0   :  { %s516_s0 = inlined_call_operand.hbm [shape: f32[36,512], index: 0, kind: input, shape index: {}]   ;;  %s517_s1 = inlined_call_operand.vmem [shape: f32[8,36], index: 1, kind: input, shape index: {}]   ;;  %s518_s2 = inlined_call_operand.vmem [shape: f32[8,1], index: 2, kind: input, shape index: {}]   ;;  %s519_s3 = inlined_call_operand.vmem [shape: f32[8,1], index: 3, kind: input, shape index: {}]   ;;  %s520_s4 = inlined_call_operand.vmem [shape: f32[8,1], index: 4, kind: input, shape index: {}]   ;;  %s521_s5 = inlined_call_operand.<no memory space> [shape: f32[1,1], index: 5, kind: input, shape index: {}]   ;;  %s522_s6 = inlined_call_operand.hbm [shape: f32[1,512], index: 6, kind: output, shape index: {}]  }
   0x1   :  { %v11_v0 = vstv %s521_s5 }
   0x2   :  { %12 = vst [vmem:[#allocation2] sm:$0x1] %v11_v0 }
   0x3   :  { %13 = vsyncpa [#allocation4], 0 }
   0x4   :  { %14 = vsyncpa [#allocation5], 0  ;;  %s19_s25 = sshll.u32 %s516_s0, 4  ;;  %s424_s26 = smov [#allocation3]   ;;  %s20_s25 = int_to_ptr.hbm [resolvable:$true] %s19_s25 }
   0x5   :  { %s21_s27 = sshll.u32 %s424_s26, 4  ;;  %s425_s28 = smov 512   ;;  %s22_s27 = int_to_ptr.vmem [resolvable:$true] %s21_s27 }
   0x6   :  { %s426_s29 = smov 32  }
   0x7   :  { %27 = dma.hbm_to_vmem [thread:$0]  %s20_s25, 2560, %s22_s27, [#allocation4], %s425_s28, %s425_s28, %s426_s29  }
   0x8   :  { %420 = dma.done.wait [#allocation4], 2560  }
   0x9   :  { %421 = vsyncadd [#allocation4], 4294964736  ;;  %v427_v1 = vmov 0   ;;  %vm67_vm0 = vcmask 1043456   ;;  %v58_v2 = vld [vmem:[#allocation3 + $0x80] sm:$0xf] }
   0xa   :  { %354 = vset.pattern.permute.xlu0 %v427_v1  ;;  %355 = vset.pattern.permute.xlu1 %v427_v1  ;;  %v59_v3 = vld [vmem:[#allocation3 + $0x88] sm:$0xf]  ;;  %v60_v4 = vld [vmem:[#allocation3 + $0x90] sm:$0xf]  ;;  %v61_v5 = vld [vmem:[#allocation3 + $0x98] sm:$0xf] }
   0xb   :  { %341 = vmatpush.msk.msra.mxu0 %vm67_vm0, %v58_v2  ;;  %343 = vmatpush.msk.msra.mxu1 %vm67_vm0, %v59_v3  ;;  %v54_v6 = vld [vmem:[#allocation3 + $0x60] sm:$0xff]  ;;  %v55_v7 = vld [vmem:[#allocation3 + $0x68] sm:$0xff]  ;;  %v56_v8 = vld [vmem:[#allocation3 + $0x70] sm:$0xff]  ;;  %vm63_vm1 = vcmask 293888   ;;  %vm312_vm7 = vcmask 1040384   ;;  %s331_s12 = sshll.u32 %s522_s6, 4  ;;  %s332_s12 = int_to_ptr.hbm [resolvable:$true] %s331_s12 }
   0xc   :  { %345 = vmatpush.msk.msra.mxu2 %vm67_vm0, %v60_v4  ;;  %347 = vmatpush.msk.msra.mxu3 %vm67_vm0, %v61_v5  ;;  %v57_v9 = vld [vmem:[#allocation3 + $0x78] sm:$0xff]  ;;  %v50_v10 = vld [vmem:[#allocation3 + $0x40] sm:$0xff]  ;;  %v51_v11 = vld [vmem:[#allocation3 + $0x48] sm:$0xff] }
   0xd   :  { %92 = vmatpush.msra.mxu0 %v54_v6  ;;  %112 = vmatpush.msra.mxu1 %v55_v7  ;;  %v52_v12 = vld [vmem:[#allocation3 + $0x50] sm:$0xff]  ;;  %v53_v13 = vld [vmem:[#allocation3 + $0x58] sm:$0xff]  ;;  %v46_v14 = vld [vmem:[#allocation3 + $0x20] sm:$0xff] }
   0xe   :  { %132 = vmatpush.msra.mxu2 %v56_v8  ;;  %152 = vmatpush.msra.mxu3 %v57_v9  ;;  %v47_v15 = vld [vmem:[#allocation3 + $0x28] sm:$0xff]  ;;  %v48_v16 = vld [vmem:[#allocation3 + $0x30] sm:$0xff]  ;;  %v49_v17 = vld [vmem:[#allocation3 + $0x38] sm:$0xff] }
   0xf   :  { %93 = vmatpush.msra.mxu0 %v50_v10  ;;  %113 = vmatpush.msra.mxu1 %v51_v11  ;;  %v42_v18 = vld [vmem:[#allocation3] sm:$0xff]  ;;  %v43_v19 = vld [vmem:[#allocation3 + $0x8] sm:$0xff]  ;;  %v44_v20 = vld [vmem:[#allocation3 + $0x10] sm:$0xff] }
  0x10   :  { %133 = vmatpush.msra.mxu2 %v52_v12  ;;  %153 = vmatpush.msra.mxu3 %v53_v13  ;;  %v45_v21 = vld [vmem:[#allocation3 + $0x18] sm:$0xff] }
  0x11   :  { %94 = vmatpush.msra.mxu0 %v46_v14  ;;  %114 = vmatpush.msra.mxu1 %v47_v15  ;;  %v62_v22 = vld [vmem:[%s517_s1] sm:$0xff] }
  0x12   :  { %134 = vmatpush.msra.mxu2 %v48_v16  ;;  %154 = vmatpush.msra.mxu3 %v49_v17  ;;  %v160_v23 = vld [vmem:[%s518_s2] sm:$0xff]  ;;  %s428_s2 = smov [#allocation6]  }
  0x13   :  { %95 = vmatpush.msra.mxu0 %v42_v18  ;;  %115 = vmatpush.msra.mxu1 %v43_v19  ;;  %v184_v24 = vld [vmem:[%s520_s4] sm:$0xff] }
  0x14   :  { %135 = vmatpush.msra.mxu2 %v44_v20  ;;  %155 = vmatpush.msra.mxu3 %v45_v21  ;;  %v170_v25 = vld [vmem:[%s519_s3] sm:$0xff]  ;;  %s329_s3 = sshll.u32 %s428_s2, 4  ;;  %s330_s3 = int_to_ptr.vmem [resolvable:$true] %s329_s3 }
  0x15   :  { %342 = vmatmul.msk.f32.vlgmr.msra.gmra.mxu0 %vm63_vm1, %v62_v22  ;;  %344 = vmatmul.msk.f32.vlgmr.msra.gmra.mxu1 %vm63_vm1, %v62_v22  ;;  %v218_v26 = vld [vmem:[#allocation2] sm:$0x1] }
  0x16   :  { %346 = vmatmul.msk.f32.vlgmr.msra.gmra.mxu2 %vm63_vm1, %v62_v22  ;;  %348 = vmatmul.msk.f32.vlgmr.msra.gmra.mxu3 %vm63_vm1, %v62_v22 }
  0x17   :  { %163 = vperm.xlu0 %354, %v160_v23   ;;  %187 = vperm.xlu1 %355, %v184_v24  }
  0x1f   :  { %173 = vperm.xlu0 %354, %v170_v25   ;;  %221 = vperm.xlu1 %355, %v218_v26  }
  0x89   :  { %v164_v27 = vpop.permute.xlu0 %163  ;;  %v188_v37 = vpop.permute.xlu1 %187 }
  0x91   :  { %v174_v32 = vpop.permute.xlu0 %173  ;;  %v222_v60 = vpop.permute.xlu1 %221 }
  0x92   :  { %v97_v28 = vpop.f32.mrf.mxu0  ;;  %v117_v29 = vpop.f32.mrf.mxu1  ;;  %v224_v3 = vperm.slane %v222_v60, 0 }
  0x93   :  { %v166_v30 = vmul.f32 %v164_v27, %v97_v28  ;;  %v167_v31 = vmul.f32 %v164_v27, %v117_v29 }
  0x95   :  { %v176_v33 = vadd.f32 %v174_v32, %v166_v30  ;;  %v177_v34 = vadd.f32 %v174_v32, %v167_v31 }
  0x97   :  { %v180_v35 = vmax.f32 %v176_v33, 0.0  ;;  %v181_v36 = vmax.f32 %v177_v34, 0.0 }
  0x99   :  { %v190_v38 = vmul.f32 %v188_v37, %v180_v35  ;;  %v191_v39 = vmul.f32 %v188_v37, %v181_v36  ;;  %v137_v40 = vpop.f32.mrf.mxu2  ;;  %v157_v41 = vpop.f32.mrf.mxu3 }
  0x9a   :  { %v168_v42 = vmul.f32 %v164_v27, %v137_v40  ;;  %v169_v43 = vmul.f32 %v164_v27, %v157_v41 }
  0x9b   :  { %v194_v44 = vrot.slane %v190_v38, 4  ;;  %v200_v45 = vrot.slane %v191_v39, 4 }
  0x9c   :  { %v178_v46 = vadd.f32 %v174_v32, %v168_v42  ;;  %v179_v47 = vadd.f32 %v174_v32, %v169_v43 }
  0x9d   :  { %v195_v48 = vadd.f32 %v194_v44, %v190_v38  ;;  %v201_v49 = vadd.f32 %v200_v45, %v191_v39  ;;  %v319_v44 = vlaneseq }
  0x9e   :  { %v182_v50 = vmax.f32 %v178_v46, 0.0  ;;  %v183_v51 = vmax.f32 %v179_v47, 0.0 }
  0x9f   :  { %v196_v52 = vrot.slane %v195_v48, 2  ;;  %v202_v53 = vrot.slane %v201_v49, 2 }
  0xa0   :  { %v192_v54 = vmul.f32 %v188_v37, %v182_v50  ;;  %v193_v55 = vmul.f32 %v188_v37, %v183_v51 }
  0xa1   :  { %v197_v56 = vadd.f32 %v196_v52, %v195_v48  ;;  %v203_v57 = vadd.f32 %v202_v53, %v201_v49 }
  0xa2   :  { %v206_v58 = vrot.slane %v192_v54, 4  ;;  %v212_v59 = vrot.slane %v193_v55, 4 }
  0xa3   :  { %v198_v61 = vrot.slane %v197_v56, 1  ;;  %v204_v62 = vrot.slane %v203_v57, 1 }
  0xa4   :  { %v207_v63 = vadd.f32 %v206_v58, %v192_v54  ;;  %v213_v0 = vadd.f32 %v212_v59, %v193_v55 }
  0xa5   :  { %v199_v1 = vadd.f32 %v198_v61, %v197_v56  ;;  %v205_v2 = vadd.f32 %v204_v62, %v203_v57 }
  0xa6   :  { %v208_v4 = vrot.slane %v207_v63, 2  ;;  %v214_v5 = vrot.slane %v213_v0, 2 }
  0xa7   :  { %v225_v6 = vadd.f32 %v224_v3, %v199_v1  ;;  %v226_v7 = vadd.f32 %v224_v3, %v205_v2 }
  0xa8   :  { %v209_v8 = vadd.f32 %v208_v4, %v207_v63  ;;  %v215_v9 = vadd.f32 %v214_v5, %v213_v0 }
  0xa9   :  { %v229_v10 = vsub.f32 0.0, %v225_v6  ;;  %v230_v11 = vsub.f32 0.0, %v226_v7 }
  0xaa   :  { %v210_v12 = vrot.slane %v209_v8, 1  ;;  %v216_v13 = vrot.slane %v215_v9, 1 }
  0xab   :  { %v233_v14 = vmul.f32 1.442695, %v229_v10  ;;  %v235_v15 = vmul.f32 1.442695, %v230_v11 }
  0xac   :  { %v211_v16 = vadd.f32 %v210_v12, %v209_v8  ;;  %v217_v17 = vadd.f32 %v216_v13, %v215_v9 }
  0xad   :  { %356 = vpow2.f32 %v233_v14 }
  0xae   :  { %v227_v18 = vadd.f32 %v224_v3, %v211_v16  ;;  %v228_v19 = vadd.f32 %v224_v3, %v217_v17  ;;  %358 = vpow2.f32 %v235_v15 }
  0xb0   :  { %v231_v20 = vsub.f32 0.0, %v227_v18  ;;  %v232_v21 = vsub.f32 0.0, %v228_v19 }
  0xb2   :  { %v237_v22 = vmul.f32 1.442695, %v231_v20  ;;  %v239_v23 = vmul.f32 1.442695, %v232_v21 }
  0xb3   :  { %v357_v24 = vpop.eup %356 }
  0xb4   :  { %v359_v25 = vpop.eup %358  ;;  %360 = vpow2.f32 %v237_v22  ;;  %v482_v26 = vadd.f32 1.0, %v357_v24 }
  0xb5   :  { %362 = vpow2.f32 %v239_v23  ;;  %v242_v27 = vadd.f32 1.0, %v359_v25 }
  0xb6   :  { %364 = vrcp.f32 %v482_v26  ;;  %vm250_vm4 = vweird.f32 %v482_v26  ;;  %v256_v61 = vand.u32 2147483648, %v482_v26  ;;  %v254_v0 = vand.u32 2147483647, %v482_v26 }
  0xb7   :  { %366 = vrcp.f32 %v242_v27  ;;  %v271_v39 = vand.u32 2147483648, %v242_v27  ;;  %vm265_vm3 = vweird.f32 %v242_v27  ;;  %v269_v47 = vand.u32 2147483647, %v242_v27 }
  0xb8   :  { %v257_v9 = vor.u32 1.1754944e-38, %v256_v61 }
  0xb9   :  { %v272_v49 = vor.u32 1.1754944e-38, %v271_v39  ;;  %vm270_vm9 = vcmp.eq.f32.partialorder %v269_v47, 8.507059e+37 }
  0xba   :  { %v361_v28 = vpop.eup %360 }
  0xbb   :  { %v363_v29 = vpop.eup %362  ;;  %v243_v30 = vadd.f32 1.0, %v361_v28 }
  0xbc   :  { %v485_v31 = vpop.eup %364  ;;  %v244_v32 = vadd.f32 1.0, %v363_v29 }
  0xbd   :  { %v367_v33 = vpop.eup %366  ;;  %368 = vrcp.f32 %v243_v30  ;;  %v246_v34 = vmul.f32 %v485_v31, %v482_v26  ;;  %vm251_vm5 = vweird.f32 %v485_v31  ;;  %v284_v52 = vand.u32 2147483647, %v243_v30 }
  0xbe   :  { %v261_v35 = vmul.f32 %v367_v33, %v242_v27  ;;  %370 = vrcp.f32 %v244_v32  ;;  %vm266_vm2 = vweird.f32 %v367_v33  ;;  %v286_v53 = vand.u32 2147483648, %v243_v30  ;;  %vm503_vm11 = vmor %vm250_vm4, %vm251_vm5 }
  0xbf   :  { %v247_v37 = vsub.f32 1.0, %v246_v34  ;;  %vm492_vm6 = vmor %vm265_vm3, %vm266_vm2  ;;  %v299_v56 = vand.u32 2147483647, %v244_v32  ;;  %v301_v57 = vand.u32 2147483648, %v244_v32  ;;  %vm280_vm12 = vweird.f32 %v243_v30 }
  0xc0   :  { %v262_v36 = vsub.f32 1.0, %v261_v35  ;;  %v287_v1 = vor.u32 1.1754944e-38, %v286_v53  ;;  %vm295_vm14 = vweird.f32 %v244_v32  ;;  %vm285_vm15 = vcmp.eq.f32.partialorder %v284_v52, 8.507059e+37 }
  0xc1   :  { %v248_v46 = vmul.f32 %v485_v31, %v247_v37  ;;  %vm300_vm1 = vcmp.eq.f32.partialorder %v299_v56, 8.507059e+37  ;;  %v302_v4 = vor.u32 1.1754944e-38, %v301_v57  ;;  %vm314_vm2 = vcmask 1042434  }
  0xc2   :  { %v263_v38 = vmul.f32 %v367_v33, %v262_v36  ;;  %vm255_vm3 = vcmp.eq.f32.partialorder %v254_v0, 8.507059e+37  ;;  %vm316_vm4 = vcmask 1041408   ;;  %vm321_vm5 = vcmp.lt.s32.totalorder %v319_v44, 512 }
  0xc3   :  { %v369_v40 = vpop.eup %368  ;;  %v249_v58 = vadd.f32 %v485_v31, %v248_v46 }
  0xc4   :  { %v371_v41 = vpop.eup %370  ;;  %v276_v42 = vmul.f32 %v369_v40, %v243_v30  ;;  %v264_v43 = vadd.f32 %v367_v33, %v263_v38  ;;  %vm281_vm8 = vweird.f32 %v369_v40 }
  0xc5   :  { %v291_v45 = vmul.f32 %v371_v41, %v244_v32  ;;  %vm296_vm10 = vweird.f32 %v371_v41  ;;  %vm282_vm13 = vmor %vm280_vm12, %vm281_vm8  ;;  %v253_v5 = vsel %vm503_vm11, %v485_v31, %v249_v58 }
  0xc6   :  { %v277_v50 = vsub.f32 1.0, %v276_v42  ;;  %v268_v51 = vsel %vm492_vm6, %v367_v33, %v264_v43  ;;  %vm297_vm0 = vmor %vm295_vm14, %vm296_vm10  ;;  %v258_v13 = vsel %vm255_vm3, %v257_v9, %v253_v5 }
  0xc7   :  { %v292_v54 = vsub.f32 1.0, %v291_v45  ;;  %v273_v62 = vsel %vm270_vm9, %v272_v49, %v268_v51 }
  0xc8   :  { %v278_v55 = vmul.f32 %v369_v40, %v277_v50  ;;  %v309_v8 = vrot.slane %v273_v62, 7 }
  0xc9   :  { %v293_v59 = vmul.f32 %v371_v41, %v292_v54 }
  0xca   :  { %v279_v63 = vadd.f32 %v369_v40, %v278_v55  ;;  %v313_v14 = vsel %vm312_vm7, %v258_v13, %v309_v8 }
  0xcb   :  { %v294_v2 = vadd.f32 %v371_v41, %v293_v59 }
  0xcc   :  { %v283_v3 = vsel %vm282_vm13, %v369_v40, %v279_v63 }
  0xcd   :  { %v288_v6 = vsel %vm285_vm15, %v287_v1, %v283_v3  ;;  %v298_v7 = vsel %vm297_vm0, %v371_v41, %v294_v2 }
  0xce   :  { %v303_v10 = vsel %vm300_vm1, %v302_v4, %v298_v7  ;;  %v310_v11 = vrot.slane %v288_v6, 6 }
  0xcf   :  { %v311_v12 = vrot.slane %v303_v10, 5 }
  0xd1   :  { %v315_v15 = vsel %vm314_vm2, %v310_v11, %v311_v12 }
  0xd2   :  { %v317_v16 = vsel %vm316_vm4, %v313_v14, %v315_v15 }
  0xd3   :  { %323 = vst.msk [vmem:[#allocation6] sm:$0xf] %vm321_vm5, %v317_v16 }
  0xd4   :  { %334 = dma.vmem_to_hbm [thread:$0]  %s330_s3, 64, %s332_s12, [#allocation5]  }
  0xd5   :  { %422 = dma.done.wait [#allocation5], 64  }
  0xd6   :  { %423 = vsyncadd [#allocation5], 4294967232 }
  0xd7   :  { %339 = vsyncpa [#allocation4], 1 }
  0xd8   :  { %340 = vsyncpa [#allocation5], 1 }

</bundles_post_ra>
